<compile_context>
chip_gen: v6e
topology: v6e:2x2x1
jax: 0.10.0
libtpu: 0.0.40
codegen_flags: <defaults>
</compile_context>

<pallas_src>
import functools
import math

import jax
import jax.numpy as jnp
from jax import lax
from jax.experimental import pallas as pl
from jax.experimental.pallas import tpu as pltpu

LANE = 128
TILE_M = 1024  # rows per grid step -> (1024, 128) f32 block = 512 KiB


def _mix32(v):
    """lowbias32 avalanche hash on uint32 values (works on scalars/arrays)."""
    v = v ^ (v >> 16)
    v = v * jnp.uint32(0x7FEB352D)
    v = v ^ (v >> 15)
    v = v * jnp.uint32(0x846CA68B)
    v = v ^ (v >> 16)
    return v


def _noise_kernel(seed_ref, x_ref, o_ref, *, sigma, tile_m):
    shape = x_ref.shape  # (tile_m, LANE)
    i = pl.program_id(0)

    # Unique 32-bit counter per element of the full (m, LANE) array.
    row = lax.broadcasted_iota(jnp.int32, shape, 0).astype(jnp.uint32)
    col = lax.broadcasted_iota(jnp.int32, shape, 1).astype(jnp.uint32)
    base = (i.astype(jnp.uint32) * jnp.uint32(tile_m) + row) * jnp.uint32(
        shape[1]
    ) + col

    # Two decorrelated bit-streams keyed on (seed, element index).
    s = seed_ref[0].astype(jnp.uint32)
    k1 = _mix32(s ^ jnp.uint32(0x9E3779B9))
    k2 = _mix32(s ^ jnp.uint32(0x85EBCA6B))
    b1 = _mix32(base ^ k1)
    b2 = _mix32(base ^ k2)

    # Uniforms from the top 24 bits: u1 in (0, 1] (safe for log), u2 in [0, 1).
    scale = jnp.float32(1.0 / (1 << 24))
    u1 = ((b1 >> 8).astype(jnp.int32).astype(jnp.float32) + 1.0) * scale
    u2 = (b2 >> 8).astype(jnp.int32).astype(jnp.float32) * scale

    # Box-Muller -> standard normal (EUP/VPU work, hidden under the DMA).
    r = jnp.sqrt(-2.0 * jnp.log(u1))
    z = r * jnp.cos(jnp.float32(2.0 * math.pi) * u2)

    xf = x_ref[...].astype(jnp.float32)
    o_ref[...] = (xf + jnp.float32(sigma) * z).astype(o_ref.dtype)


def _noise_2d(x2d, sigma, seed_arr):
    m, lanes = x2d.shape
    tile_m = min(TILE_M, m)  # either a multiple of 8 (1024) or the full dim
    grid_m = pl.cdiv(m, tile_m)  # partial last block is masked by Pallas

    kernel = functools.partial(_noise_kernel, sigma=float(sigma), tile_m=tile_m)

    return pl.pallas_call(
        kernel,
        out_shape=jax.ShapeDtypeStruct((m, lanes), x2d.dtype),
        grid_spec=pltpu.PrefetchScalarGridSpec(
            num_scalar_prefetch=1,
            grid=(grid_m,),
            in_specs=[pl.BlockSpec((tile_m, lanes), lambda i, seed: (i, 0))],
            out_specs=pl.BlockSpec((tile_m, lanes), lambda i, seed: (i, 0)),
        ),
        compiler_params=pltpu.CompilerParams(
            dimension_semantics=("parallel",),  # every grid step is independent
        ),
    )(seed_arr, x2d)


def noise_layer(x, sigma, seed, *, training=True):
    """Pallas implementation of NoiseLayer.forward.

    training=False -> identity (matches `if not self.training: return x`).
    training=True  -> x + sigma * N(0, 1), deterministic given `seed`.
    """
    if not training:
        return x

    orig_shape = x.shape
    n = x.size
    seed_arr = jnp.asarray([seed], dtype=jnp.int32)

    n_bulk = (n // LANE) * LANE
    if n_bulk == n:
        # Zero-copy reshape to a lane-dense slab; no pad / slice HBM passes.
        out2d = _noise_2d(x.reshape(n // LANE, LANE), sigma, seed_arr)
        return out2d.reshape(orig_shape)

    # Rare ragged case: kernel on the 128-aligned bulk, plain JAX on the
    # (<128 element) tail instead of padding the full tensor.
    flat = x.reshape(-1)
    pieces = []
    if n_bulk:
        pieces.append(
            _noise_2d(
                flat[:n_bulk].reshape(n_bulk // LANE, LANE), sigma, seed_arr
            ).reshape(-1)
        )
    tail = flat[n_bulk:]
    key = jax.random.fold_in(jax.random.PRNGKey(int(seed)), n_bulk)
    tail_noise = jax.random.normal(key, tail.shape, dtype=jnp.float32)
    pieces.append(
        (tail.astype(jnp.float32) + jnp.float32(sigma) * tail_noise).astype(x.dtype)
    )
    return jnp.concatenate(pieces).reshape(orig_shape)


if __name__ == "__main__":
    key = jax.random.PRNGKey(0)
    x = jax.random.normal(key, (2, 4, 16, 16), dtype=jnp.float32)
    sigma = 0.1

    # training mode: x + sigma * noise
    y = noise_layer(x, sigma, seed=0, training=True)
    y = jax.block_until_ready(y)
    assert y.shape == x.shape and y.dtype == x.dtype

    # sanity: noise is finite, nonzero, ~sigma-scaled and roughly zero-mean
    diff = y - x
    assert bool(jnp.all(jnp.isfinite(diff)))
    assert float(jnp.max(jnp.abs(diff))) > 0.0
    assert abs(float(jnp.std(diff)) - sigma) < 0.5 * sigma
    assert abs(float(jnp.mean(diff))) < 0.2 * sigma

    # eval mode: identity
    y_eval = noise_layer(x, sigma, seed=0, training=False)
    y_eval = jax.block_until_ready(y_eval)
    assert bool(jnp.array_equal(y_eval, x))

    print("KERNEL_OK")
</pallas_src>

<mosaic_0001>
module attributes {stable_mosaic.version = 11 : i64} {
  func.func @_noise_kernel(%arg0: i32, %arg1: memref<1xi32, #tpu.memory_space<smem>>, %arg2: memref<16x128xf32, #tpu.memory_space<vmem>>, %arg3: memref<16x128xf32, #tpu.memory_space<vmem>>) attributes {dimension_semantics = [#tpu.dimension_semantics<parallel>], iteration_bounds = array<i64: 1>, scalar_prefetch = 1 : i64, scratch_operands = 0 : i64, tpu.core_type = #tpu.core_type<tc>, window_params = [{transform_indices = @transform_0, window_bounds = array<i64: 16, 128>}, {transform_indices = @transform_1, window_bounds = array<i64: 16, 128>}]} {
    %0 = tpu.iota {dimensions = array<i32: 0>} : vector<16x128xi32>
    %1 = tpu.iota {dimensions = array<i32: 1>} : vector<16x128xi32>
    %c16_i32 = arith.constant 16 : i32
    %2 = arith.muli %arg0, %c16_i32 : i32
    %3 = vector.broadcast %2 : i32 to vector<16x128xi32>
    %4 = arith.addi %3, %0 : vector<16x128xi32>
    %c128_i32 = arith.constant 128 : i32
    %5 = vector.broadcast %c128_i32 : i32 to vector<16x128xi32>
    %6 = arith.muli %4, %5 : vector<16x128xi32>
    %7 = arith.addi %6, %1 : vector<16x128xi32>
    %c0 = arith.constant 0 : index
    %8 = memref.load %arg1[%c0] : memref<1xi32, #tpu.memory_space<smem>>
    %c-1640531527_i32 = arith.constant -1640531527 : i32
    %9 = arith.xori %8, %c-1640531527_i32 : i32
    %c16_i32_0 = arith.constant 16 : i32
    %10 = arith.shrui %9, %c16_i32_0 : i32
    %11 = arith.xori %9, %10 : i32
    %c2146121005_i32 = arith.constant 2146121005 : i32
    %12 = arith.muli %11, %c2146121005_i32 : i32
    %c15_i32 = arith.constant 15 : i32
    %13 = arith.shrui %12, %c15_i32 : i32
    %14 = arith.xori %12, %13 : i32
    %c-2073254261_i32 = arith.constant -2073254261 : i32
    %15 = arith.muli %14, %c-2073254261_i32 : i32
    %c16_i32_1 = arith.constant 16 : i32
    %16 = arith.shrui %15, %c16_i32_1 : i32
    %17 = arith.xori %15, %16 : i32
    %c-2048144789_i32 = arith.constant -2048144789 : i32
    %18 = arith.xori %8, %c-2048144789_i32 : i32
    %c16_i32_2 = arith.constant 16 : i32
    %19 = arith.shrui %18, %c16_i32_2 : i32
    %20 = arith.xori %18, %19 : i32
    %c2146121005_i32_3 = arith.constant 2146121005 : i32
    %21 = arith.muli %20, %c2146121005_i32_3 : i32
    %c15_i32_4 = arith.constant 15 : i32
    %22 = arith.shrui %21, %c15_i32_4 : i32
    %23 = arith.xori %21, %22 : i32
    %c-2073254261_i32_5 = arith.constant -2073254261 : i32
    %24 = arith.muli %23, %c-2073254261_i32_5 : i32
    %c16_i32_6 = arith.constant 16 : i32
    %25 = arith.shrui %24, %c16_i32_6 : i32
    %26 = arith.xori %24, %25 : i32
    %27 = vector.broadcast %17 : i32 to vector<16x128xi32>
    %28 = arith.xori %7, %27 : vector<16x128xi32>
    %c16_i32_7 = arith.constant 16 : i32
    %29 = vector.broadcast %c16_i32_7 : i32 to vector<16x128xi32>
    %30 = arith.shrui %28, %29 : vector<16x128xi32>
    %31 = arith.xori %28, %30 : vector<16x128xi32>
    %c2146121005_i32_8 = arith.constant 2146121005 : i32
    %32 = vector.broadcast %c2146121005_i32_8 : i32 to vector<16x128xi32>
    %33 = arith.muli %31, %32 : vector<16x128xi32>
    %c15_i32_9 = arith.constant 15 : i32
    %34 = vector.broadcast %c15_i32_9 : i32 to vector<16x128xi32>
    %35 = arith.shrui %33, %34 : vector<16x128xi32>
    %36 = arith.xori %33, %35 : vector<16x128xi32>
    %c-2073254261_i32_10 = arith.constant -2073254261 : i32
    %37 = vector.broadcast %c-2073254261_i32_10 : i32 to vector<16x128xi32>
    %38 = arith.muli %36, %37 : vector<16x128xi32>
    %c16_i32_11 = arith.constant 16 : i32
    %39 = vector.broadcast %c16_i32_11 : i32 to vector<16x128xi32>
    %40 = arith.shrui %38, %39 : vector<16x128xi32>
    %41 = arith.xori %38, %40 : vector<16x128xi32>
    %42 = vector.broadcast %26 : i32 to vector<16x128xi32>
    %43 = arith.xori %7, %42 : vector<16x128xi32>
    %c16_i32_12 = arith.constant 16 : i32
    %44 = vector.broadcast %c16_i32_12 : i32 to vector<16x128xi32>
    %45 = arith.shrui %43, %44 : vector<16x128xi32>
    %46 = arith.xori %43, %45 : vector<16x128xi32>
    %c2146121005_i32_13 = arith.constant 2146121005 : i32
    %47 = vector.broadcast %c2146121005_i32_13 : i32 to vector<16x128xi32>
    %48 = arith.muli %46, %47 : vector<16x128xi32>
    %c15_i32_14 = arith.constant 15 : i32
    %49 = vector.broadcast %c15_i32_14 : i32 to vector<16x128xi32>
    %50 = arith.shrui %48, %49 : vector<16x128xi32>
    %51 = arith.xori %48, %50 : vector<16x128xi32>
    %c-2073254261_i32_15 = arith.constant -2073254261 : i32
    %52 = vector.broadcast %c-2073254261_i32_15 : i32 to vector<16x128xi32>
    %53 = arith.muli %51, %52 : vector<16x128xi32>
    %c16_i32_16 = arith.constant 16 : i32
    %54 = vector.broadcast %c16_i32_16 : i32 to vector<16x128xi32>
    %55 = arith.shrui %53, %54 : vector<16x128xi32>
    %56 = arith.xori %53, %55 : vector<16x128xi32>
    %c8_i32 = arith.constant 8 : i32
    %57 = vector.broadcast %c8_i32 : i32 to vector<16x128xi32>
    %58 = arith.shrui %41, %57 : vector<16x128xi32>
    %59 = arith.sitofp %58 : vector<16x128xi32> to vector<16x128xf32>
    %cst = arith.constant 1.000000e+00 : f32
    %60 = vector.broadcast %cst : f32 to vector<16x128xf32>
    %61 = arith.addf %59, %60 : vector<16x128xf32>
    %cst_17 = arith.constant 5.96046448E-8 : f32
    %62 = vector.broadcast %cst_17 : f32 to vector<16x128xf32>
    %63 = arith.mulf %61, %62 : vector<16x128xf32>
    %c8_i32_18 = arith.constant 8 : i32
    %64 = vector.broadcast %c8_i32_18 : i32 to vector<16x128xi32>
    %65 = arith.shrui %56, %64 : vector<16x128xi32>
    %66 = arith.sitofp %65 : vector<16x128xi32> to vector<16x128xf32>
    %cst_19 = arith.constant 5.96046448E-8 : f32
    %67 = vector.broadcast %cst_19 : f32 to vector<16x128xf32>
    %68 = arith.mulf %66, %67 : vector<16x128xf32>
    %69 = math.log %63 : vector<16x128xf32>
    %cst_20 = arith.constant -2.000000e+00 : f32
    %70 = vector.broadcast %cst_20 : f32 to vector<16x128xf32>
    %71 = arith.mulf %70, %69 : vector<16x128xf32>
    %72 = math.sqrt %71 : vector<16x128xf32>
    %cst_21 = arith.constant 6.28318548 : f32
    %73 = vector.broadcast %cst_21 : f32 to vector<16x128xf32>
    %74 = arith.mulf %73, %68 : vector<16x128xf32>
    %75 = math.cos %74 : vector<16x128xf32>
    %76 = arith.mulf %72, %75 : vector<16x128xf32>
    %c0_22 = arith.constant 0 : index
    %c0_23 = arith.constant 0 : index
    %77 = vector.load %arg2[%c0_22, %c0_23] : memref<16x128xf32, #tpu.memory_space<vmem>>, vector<16x128xf32>
    %cst_24 = arith.constant 1.000000e-01 : f32
    %78 = vector.broadcast %cst_24 : f32 to vector<16x128xf32>
    %79 = arith.mulf %78, %76 : vector<16x128xf32>
    %80 = arith.addf %77, %79 : vector<16x128xf32>
    %c0_25 = arith.constant 0 : index
    %c0_26 = arith.constant 0 : index
    %81 = vector.load %arg3[%c0_25, %c0_26] : memref<16x128xf32, #tpu.memory_space<vmem>>, vector<16x128xf32>
    tpu.vector_store %arg3[%c0_25, %c0_26], %80 {strides = array<i32>} : memref<16x128xf32, #tpu.memory_space<vmem>>, vector<16x128xf32>,
    return
  }
  func.func @transform_0(%arg0: i32, %arg1: memref<1xi32, #tpu.memory_space<smem>>) -> (i32, i32) {
    %c0_i32 = arith.constant 0 : i32
    %c0_i32_0 = arith.constant 0 : i32
    return %arg0, %c0_i32 : i32, i32
  }
  func.func @transform_1(%arg0: i32, %arg1: memref<1xi32, #tpu.memory_space<smem>>) -> (i32, i32) {
    %c0_i32 = arith.constant 0 : i32
    %c0_i32_0 = arith.constant 0 : i32
    return %arg0, %c0_i32 : i32, i32
  }
}

</mosaic_0001>

<bundles_post_ra>
// kernel: tpu_custom_call.1
= control target key start
LH: loop header
LB: loop body
LE: loop exit
PB: predicated region body
PF: predicated region fallthrough
CT: control target
= control target key end

     0   :  { %8 = vsyncpa [#allocation5], 0  ;;  %s598_s0 = inlined_call_operand.<no memory space> [shape: s32[1], index: 0, kind: input, shape index: {}]   ;;  %s599_s1 = inlined_call_operand.hbm [shape: f32[16,128], index: 1, kind: input, shape index: {}]   ;;  %s600_s2 = inlined_call_operand.hbm [shape: f32[16,128], index: 2, kind: output, shape index: {}]  }
   0x1   :  { %9 = vsyncpa [#allocation6], 0  ;;  %s450_s9 = smov [#allocation4]  }
   0x2   :  { %s15_s10 = sshll.u32 %s450_s9, 4  ;;  %s16_s10 = int_to_ptr.vmem [resolvable:$true] %s15_s10 }
   0x3   :  { %s414_s11 = scalar_lea.vmem %s16_s10, 256  ;;  %p419_p1 = scmp.lt.s32.totalorder %s16_s10, %s16_s10 }
   0x4   :  { %p415_p0 = scmp.ne.s32.totalorder %s16_s10, %s414_s11  ;;  %p420_p2 = scmp.lt.s32.totalorder %s414_s11, %s414_s11 }
   0x6   :  { %p421_p3 = por %p420_p2, %p419_p1 }
   0x8   :  { %p422_p4 = pnand %p421_p3, %p415_p0 }
   0xa   :  { %425 = shalt.err (!%p422_p4)
}
   0xb   :  { %s451_s12 = smov 128   ;;  %s452_s13 = smov 8  }
   0xc   :  { %21 = dma.hbm_to_vmem [thread:$0]  %s599_s1, 256, %s16_s10, [#allocation5], %s451_s12, %s451_s12, %s452_s13  }
   0xd   :  { %446 = dma.done.wait [#allocation5], 256  }
   0xe   :  { %447 = vsyncadd [#allocation5], 4294967040  ;;  %v25_v0 = vlaneseq  ;;  %s39_s18 = sxor.u32 2654435769, %s598_s0  ;;  %s48_s21 = sxor.u32 2246822507, %s598_s0 }
   0xf   :  { %s40_s22 = sshrl.u32 %s39_s18, 16  ;;  %s49_s23 = sshrl.u32 %s48_s21, 16 }
  0x10   :  { %v26_v1 = vshrl.u32 %v25_v0, 7  ;;  %s41_s24 = sxor.u32 %s40_s22, %s39_s18  ;;  %s50_s25 = sxor.u32 %s49_s23, %s48_s21  ;;  %v29_v3 = vand.u32 127, %v25_v0 }
  0x11   :  { %s42_s26 = smul.u32 2146121005, %s41_s24  ;;  %s459_s8 = smov [#allocation7]  }
  0x12   :  { %v27_v2 = vadd.s32 8, %v26_v1  ;;  %s51_s27 = smul.u32 2146121005, %s50_s25  ;;  %v34_v4 = vmul.u32 128, %v26_v1  ;;  %s352_s9 = sshll.u32 %s459_s8, 4  ;;  %s353_s9 = int_to_ptr.vmem [resolvable:$true] %s352_s9 }
  0x13   :  { %s43_s1 = sshrl.u32 %s42_s26, 15  ;;  %s426_s10 = scalar_lea.vmem %s353_s9, 256 }
  0x14   :  { %v35_v5 = vmul.u32 128, %v27_v2  ;;  %s44_s28 = sxor.u32 %s43_s1, %s42_s26  ;;  %s52_s29 = sshrl.u32 %s51_s27, 15  ;;  %v36_v6 = vadd.s32 %v34_v4, %v29_v3  ;;  %v453_v4 = vmov 683565275  }
  0x15   :  { %s45_s30 = smul.u32 2221713035, %s44_s28  ;;  %s53_s3 = sxor.u32 %s52_s29, %s51_s27 }
  0x16   :  { %s54_s4 = smul.u32 2221713035, %s53_s3  ;;  %v37_v7 = vadd.s32 %v35_v5, %v29_v3  ;;  %p427_p5 = scmp.ne.s32.totalorder %s353_s9, %s426_s10 }
  0x17   :  { %s46_s0 = sshrl.u32 %s45_s30, 16  ;;  %p431_p6 = scmp.lt.s32.totalorder %s353_s9, %s353_s9 }
  0x18   :  { %s47_s5 = sxor.u32 %s46_s0, %s45_s30  ;;  %s55_s6 = sshrl.u32 %s54_s4, 16 }
  0x19   :  { %s56_s7 = sxor.u32 %s55_s6, %s54_s4  ;;  %v57_v8 = vstv %s47_s5  ;;  %p432_p7 = scmp.lt.s32.totalorder %s426_s10, %s426_s10 }
  0x1a   :  { %v76_v9 = vstv %s56_s7  ;;  %v58_v12 = vxor.u32 %v57_v8, %v36_v6  ;;  %v59_v17 = vxor.u32 %v57_v8, %v37_v7 }
  0x1b   :  { %v77_v10 = vxor.u32 %v76_v9, %v36_v6  ;;  %v78_v11 = vxor.u32 %v76_v9, %v37_v7  ;;  %v454_v6 = vmov 2475754826   ;;  %p433_p8 = por %p432_p7, %p431_p6 }
  0x1c   :  { %v60_v18 = vshrl.u32 %v58_v12, 16  ;;  %v61_v23 = vshrl.u32 %v59_v17, 16 }
  0x1d   :  { %v79_v13 = vshrl.u32 %v77_v10, 16  ;;  %v80_v14 = vshrl.u32 %v78_v11, 16  ;;  %p434_p9 = pnand %p433_p8, %p427_p5 }
  0x1e   :  { %v62_v24 = vxor.u32 %v60_v18, %v58_v12  ;;  %v63_v29 = vxor.u32 %v61_v23, %v59_v17 }
  0x1f   :  { %v81_v15 = vxor.u32 %v79_v13, %v77_v10  ;;  %v82_v16 = vxor.u32 %v80_v14, %v78_v11  ;;  %v455_v13 = vmov 2131351028  }
  0x20   :  { %v64_v30 = vmul.u32 2146121005, %v62_v24  ;;  %v65_v35 = vmul.u32 2146121005, %v63_v29 }
  0x21   :  { %v83_v19 = vmul.u32 2146121005, %v81_v15  ;;  %v84_v20 = vmul.u32 2146121005, %v82_v16  ;;  %v456_v16 = vmov 2102212464  }
  0x22   :  { %v66_v36 = vshrl.u32 %v64_v30, 15  ;;  %v67_v41 = vshrl.u32 %v65_v35, 15 }
  0x23   :  { %v85_v21 = vshrl.u32 %v83_v19, 15  ;;  %v86_v22 = vshrl.u32 %v84_v20, 15 }
  0x24   :  { %v68_v42 = vxor.u32 %v66_v36, %v64_v30  ;;  %v69_v47 = vxor.u32 %v67_v41, %v65_v35 }
  0x25   :  { %v87_v25 = vxor.u32 %v85_v21, %v83_v19  ;;  %v88_v26 = vxor.u32 %v86_v22, %v84_v20  ;;  %v457_v19 = vmov 920167782   ;;  %v458_v22 = vmov 1326507024  }
  0x26   :  { %v70_v48 = vmul.u32 2221713035, %v68_v42  ;;  %v71_v52 = vmul.u32 2221713035, %v69_v47 }
  0x27   :  { %v89_v27 = vmul.u32 2221713035, %v87_v25  ;;  %v90_v28 = vmul.u32 2221713035, %v88_v26 }
  0x28   :  { %v72_v54 = vshrl.u32 %v70_v48, 16  ;;  %v73_v59 = vshrl.u32 %v71_v52, 16 }
  0x29   :  { %v91_v31 = vshrl.u32 %v89_v27, 16  ;;  %v92_v32 = vshrl.u32 %v90_v28, 16 }
  0x2a   :  { %v74_v61 = vxor.u32 %v72_v54, %v70_v48  ;;  %v496_v1 = vxor.u32 %v73_v59, %v71_v52 }
  0x2b   :  { %v93_v33 = vxor.u32 %v91_v31, %v89_v27  ;;  %v94_v34 = vxor.u32 %v92_v32, %v90_v28 }
  0x2c   :  { %v95_v2 = vshrl.u32 %v74_v61, 8  ;;  %v96_v28 = vshrl.u32 %v496_v1, 8 }
  0x2d   :  { %v103_v37 = vshrl.u32 %v93_v33, 8  ;;  %v104_v38 = vshrl.u32 %v94_v34, 8 }
  0x2e   :  { %v97_v29 = vcvt.s32.f32 %v95_v2 }
  0x2f   :  { %v105_v39 = vcvt.s32.f32 %v103_v37  ;;  %v106_v40 = vcvt.s32.f32 %v104_v38 }
  0x31   :  { %v107_v43 = vmul.f32 5.9604645e-08, %v105_v39  ;;  %v108_v44 = vmul.f32 5.9604645e-08, %v106_v40 }
  0x33   :  { %v487_v45 = vmul.f32 6.2831855, %v107_v43  ;;  %v489_v46 = vmul.f32 6.2831855, %v108_v44 }
  0x35   :  { %v134_v49 = vand.u32 2139095040, %v487_v45  ;;  %v237_v50 = vand.u32 2139095040, %v489_v46  ;;  %v131_v56 = vand.u32 2147483647, %v487_v45  ;;  %v234_v10 = vand.u32 2147483647, %v489_v46 }
  0x36   :  { %vm133_vm13 = vcmp.lt.s32.totalorder %v487_v45, 0 }
  0x37   :  { %v135_v51 = vshrl.u32 %v134_v49, 23  ;;  %v238_v53 = vshrl.u32 %v237_v50, 23  ;;  %v138_v62 = vand.u32 8388607, %v131_v56  ;;  %v241_v31 = vand.u32 8388607, %v234_v10 }
  0x38   :  { %vm552_vm15 = vcmp.le.f32.partialorder %v131_v56, 0.7853982 }
  0x39   :  { %v364_v55 = vadd.s32 4294967169, %v135_v51  ;;  %v368_v57 = vadd.s32 4294967169, %v238_v53  ;;  %v139_v8 = vor.u32 8388608, %v138_v62 }
  0x3b   :  { %v141_v58 = vadd.s32 1, %v364_v55  ;;  %v244_v60 = vadd.s32 1, %v368_v57  ;;  %v179_v30 = vshll.u32 %v139_v8, 8  ;;  %v99_v8 = vadd.f32 1.0, %v97_v29 }
  0x3c   :  { %v98_v29 = vcvt.s32.f32 %v96_v28 }
  0x3d   :  { %vm142_vm0 = vcmp.gt.s32.totalorder %v141_v58, 0  ;;  %vm245_vm1 = vcmp.gt.s32.totalorder %v244_v60, 0 }
  0x3e   :  { %v143_v63 = vsel %vm142_vm0, %v141_v58, 0  ;;  %v246_v11 = vsel %vm245_vm1, %v244_v60, 0  ;;  %vm236_vm0 = vcmp.lt.s32.totalorder %v489_v46, 0  ;;  %vm570_vm1 = vcmp.le.f32.partialorder %v234_v10, 0.7853982 }
  0x3f   :  { %v145_v0 = vand.u32 31, %v143_v63  ;;  %v144_v9 = vshrl.u32 %v143_v63, 5  ;;  %v248_v27 = vand.u32 31, %v246_v11  ;;  %v247_v47 = vshrl.u32 %v246_v11, 5 }
  0x40   :  { %v242_v11 = vor.u32 8388608, %v241_v31 }
  0x41   :  { %v146_v3 = vsub.s32 32, %v145_v0  ;;  %v148_v5 = vshll.u32 %v453_v4, %v145_v0  ;;  %v151_v7 = vshll.u32 %v454_v6, %v145_v0  ;;  %v154_v15 = vshll.u32 %v455_v13, %v145_v0 }
  0x42   :  { %v157_v17 = vshll.u32 %v456_v16, %v145_v0  ;;  %v160_v21 = vshll.u32 %v457_v19, %v145_v0  ;;  %vm163_vm2 = vcmp.lt.s32.totalorder %v144_v9, 1  ;;  %vm164_vm3 = vcmp.lt.s32.totalorder %v144_v9, 2 }
  0x43   :  { %v149_v12 = vshrl.u32 %v454_v6, %v146_v3  ;;  %v152_v14 = vshrl.u32 %v455_v13, %v146_v3  ;;  %v155_v18 = vshrl.u32 %v456_v16, %v146_v3  ;;  %v158_v20 = vshrl.u32 %v457_v19, %v146_v3 }
  0x44   :  { %v161_v23 = vshrl.u32 %v458_v22, %v146_v3  ;;  %v147_v24 = vshrl.u32 %v453_v4, %v146_v3  ;;  %vm165_vm4 = vcmp.lt.s32.totalorder %v144_v9, 3  ;;  %vm166_vm5 = vcmp.lt.s32.totalorder %v144_v9, 4 }
  0x45   :  { %v150_v25 = vor.u32 %v149_v12, %v148_v5  ;;  %v153_v26 = vor.u32 %v152_v14, %v151_v7  ;;  %v156_v32 = vor.u32 %v155_v18, %v154_v15  ;;  %v159_v33 = vor.u32 %v158_v20, %v157_v17 }
  0x46   :  { %v162_v34 = vor.u32 %v161_v23, %v160_v21  ;;  %v249_v37 = vsub.s32 32, %v248_v27  ;;  %v251_v51 = vshll.u32 %v453_v4, %v248_v27  ;;  %v254_v59 = vshll.u32 %v454_v6, %v248_v27 }
  0x47   :  { %v167_v35 = vsel %vm163_vm2, %v147_v24, %v150_v25  ;;  %v171_v36 = vsel %vm163_vm2, %v150_v25, %v153_v26  ;;  %v168_v38 = vsel %vm166_vm5, %v156_v32, 2102212464  ;;  %v172_v39 = vsel %vm166_vm5, %v159_v33, 920167782 }
  0x48   :  { %v175_v40 = vsel %vm163_vm2, %v153_v26, %v156_v32  ;;  %v176_v41 = vsel %vm166_vm5, %v162_v34, 1326507024  ;;  %v169_v42 = vsel %vm165_vm4, %v153_v26, %v168_v38  ;;  %v173_v43 = vsel %vm165_vm4, %v156_v32, %v172_v39 }
  0x49   :  { %v177_v44 = vsel %vm165_vm4, %v159_v33, %v176_v41  ;;  %v170_v48 = vsel %vm164_vm3, %v167_v35, %v169_v42  ;;  %v174_v49 = vsel %vm164_vm3, %v171_v36, %v173_v43  ;;  %v252_v58 = vshrl.u32 %v454_v6, %v249_v37 }
  0x4a   :  { %v178_v50 = vsel %vm164_vm3, %v175_v40, %v177_v44  ;;  %v511_v54 = vmul.u32.u64.low %v179_v30, %v174_v49  ;;  %v512_v55 = vmul.u32.u64.high %v179_v30, %v174_v49, %v511_v54  ;;  %v186_v57 = vmul.u32 %v179_v30, %v170_v48 }
  0x4b   :  { %v508_v52 = vmul.u32.u64.low %v179_v30, %v178_v50  ;;  %v509_v53 = vmul.u32.u64.high %v179_v30, %v178_v50, %v508_v52  ;;  %v255_v60 = vshrl.u32 %v455_v13, %v249_v37  ;;  %v257_v61 = vshll.u32 %v455_v13, %v248_v27 }
  0x4c   :  { %v258_v62 = vshrl.u32 %v456_v16, %v249_v37  ;;  %v260_v63 = vshll.u32 %v456_v16, %v248_v27  ;;  %v261_v0 = vshrl.u32 %v457_v19, %v249_v37  ;;  %v253_v2 = vor.u32 %v252_v58, %v251_v51 }
  0x4d   :  { %v256_v3 = vor.u32 %v255_v60, %v254_v59  ;;  %v263_v5 = vshll.u32 %v457_v19, %v248_v27  ;;  %v264_v7 = vshrl.u32 %v458_v22, %v249_v37  ;;  %vm188_vm6 = vc.u32 %v509_v53, %v511_v54 }
  0x4e   :  { %v189_v9 = vadd.s32 1, %v512_v55  ;;  %v250_v12 = vshrl.u32 %v453_v4, %v249_v37  ;;  %v259_v14 = vor.u32 %v258_v62, %v257_v61  ;;  %v262_v6 = vor.u32 %v261_v0, %v260_v63 }
  0x4f   :  { %vm266_vm7 = vcmp.lt.s32.totalorder %v247_v47, 1  ;;  %v265_v15 = vor.u32 %v264_v7, %v263_v5  ;;  %vm268_vm8 = vcmp.lt.s32.totalorder %v247_v47, 3  ;;  %vm269_vm9 = vcmp.lt.s32.totalorder %v247_v47, 4 }
  0x50   :  { %v190_v13 = vsel %vm188_vm6, %v189_v9, %v512_v55  ;;  %vm267_vm10 = vcmp.lt.s32.totalorder %v247_v47, 2  ;;  %v271_v17 = vsel %vm269_vm9, %v259_v14, 2102212464  ;;  %v274_v18 = vsel %vm266_vm7, %v253_v2, %v256_v3 }
  0x51   :  { %v191_v16 = vadd.s32 %v190_v13, %v186_v57  ;;  %v101_v19 = vmul.f32 5.9604645e-08, %v99_v8  ;;  %v275_v20 = vsel %vm269_vm9, %v262_v6, 920167782  ;;  %v282_v21 = vshll.u32 %v242_v11, 8 }
  0x52   :  { %v276_v23 = vsel %vm268_vm8, %v259_v14, %v275_v20  ;;  %v278_v24 = vsel %vm266_vm7, %v256_v3, %v259_v14  ;;  %v270_v4 = vsel %vm266_vm7, %v250_v12, %v253_v2  ;;  %v272_v25 = vsel %vm268_vm8, %v256_v3, %v271_v17 }
  0x53   :  { %v192_v22 = vadd.s32 536870912, %v191_v16  ;;  %v277_v26 = vsel %vm267_vm10, %v274_v18, %v276_v23  ;;  %v279_v27 = vsel %vm269_vm9, %v265_v15, 1326507024  ;;  %390 = vlog2.f32 %v101_v19 }
  0x54   :  { %v280_v31 = vsel %vm268_vm8, %v262_v6, %v279_v27  ;;  %v529_v33 = vmul.u32.u64.low %v282_v21, %v277_v26  ;;  %v530_v34 = vmul.u32.u64.high %v282_v21, %v277_v26, %v529_v33  ;;  %v273_v36 = vsel %vm267_vm10, %v270_v4, %v272_v25 }
  0x55   :  { %v525_v30 = vshrl.u32 %v192_v22, 30  ;;  %v281_v32 = vsel %vm267_vm10, %v278_v24, %v280_v31  ;;  %v289_v1 = vmul.u32 %v282_v21, %v273_v36  ;;  %v100_v40 = vadd.f32 1.0, %v98_v29 }
  0x56   :  { %v534_v37 = vmul.u32.u64.low %v282_v21, %v281_v32  ;;  %v535_v38 = vmul.u32.u64.high %v282_v21, %v281_v32, %v534_v37  ;;  %v292_v28 = vadd.s32 1, %v530_v34  ;;  %v187_v55 = vadd.s32 %v511_v54, %v509_v53 }
  0x57   :  { %v194_v35 = vshll.u32 %v525_v30, 30  ;;  %v102_v48 = vmul.f32 5.9604645e-08, %v100_v40  ;;  %v217_v24 = vsub.s32 4, %v525_v30  ;;  %vm223_vm7 = vweird.f32 %v487_v45 }
  0x58   :  { %vm291_vm11 = vc.u32 %v535_v38, %v529_v33  ;;  %v290_v15 = vadd.s32 %v529_v33, %v535_v38 }
  0x59   :  { %v195_v39 = vsub.s32 %v191_v16, %v194_v35  ;;  %v293_v42 = vsel %vm291_vm11, %v292_v28, %v530_v34  ;;  %392 = vlog2.f32 %v102_v48  ;;  %v218_v31 = vsel %vm133_vm13, %v217_v24, %v525_v30 }
  0x5a   :  { %v294_v44 = vadd.s32 %v293_v42, %v289_v1  ;;  %v220_v35 = vsel %vm552_vm15, 0, %v218_v31 }
  0x5b   :  { %v197_v41 = vsub.s32 0, %v195_v39  ;;  %v224_v38 = vand.u32 3, %v220_v35 }
  0x5c   :  { %v295_v50 = vadd.s32 536870912, %v294_v44 }
  0x5d   :  { %v365_v43 = vmin.u32 %v197_v41, %v195_v39  ;;  %vm229_vm4 = vcmp.eq.s32.totalorder %v224_v38, 2  ;;  %vm226_vm5 = vcmp.eq.s32.totalorder %v224_v38, 0  ;;  %vm225_vm6 = vcmp.lt.s32.totalorder %v224_v38, 2 }
  0x5e   :  { %v540_v51 = vshrl.u32 %v295_v50, 30 }
  0x5f   :  { %v199_v49 = vclz %v365_v43 }
  0x60   :  { %v391_v52 = vpop.eup %390  ;;  %v297_v58 = vshll.u32 %v540_v51, 30  ;;  %v320_v40 = vsub.s32 4, %v540_v51 }
  0x61   :  { %v366_v47 = vadd.s32 4294967294, %v199_v49  ;;  %v110_v63 = vmul.f32 0.6931472, %v391_v52 }
  0x62   :  { %v298_v62 = vsub.s32 %v294_v44, %v297_v58 }
  0x63   :  { %vm367_vm12 = vcmp.lt.s32.totalorder %v366_v47, 0  ;;  %v545_v9 = vmul.f32 -2.0, %v110_v63 }
  0x64   :  { %v202_v57 = vsel %vm367_vm12, 0, %v366_v47  ;;  %v300_v3 = vsub.s32 0, %v298_v62  ;;  %v321_v47 = vsel %vm236_vm0, %v320_v40, %v540_v51 }
  0x65   :  { %v203_v59 = vsub.s32 32, %v202_v57  ;;  %v204_v60 = vshll.u32 %v195_v39, %v202_v57  ;;  %v207_v61 = vsub.s32 4294967266, %v202_v57  ;;  %394 = vrsqrt.f32 %v545_v9 }
  0x66   :  { %v369_v8 = vmin.u32 %v300_v3, %v298_v62  ;;  %v393_v13 = vpop.eup %392  ;;  %vm117_vm2 = vcmp.eq.f32.partialorder %v545_v9, inf  ;;  %vm119_vm3 = vcmp.eq.f32.partialorder %v545_v9, 0.0  ;;  %v120_v10 = vand.u32 2147483648, %v545_v9 }
  0x67   :  { %v205_v0 = vshrl.u32 %v187_v55, %v203_v59  ;;  %v208_v2 = vadd.s32 127, %v207_v61  ;;  %v112_v22 = vmul.f32 0.6931472, %v393_v13  ;;  %v323_v59 = vsel %vm570_vm1, 0, %v321_v47  ;;  %v340_v13 = vld [vmem:[#allocation4 + $0x8] sm:$0xff] }
  0x68   :  { %v302_v53 = vclz %v369_v8  ;;  %v327_v63 = vand.u32 3, %v323_v59 }
  0x69   :  { %v206_v5 = vor.u32 %v205_v0, %v204_v60  ;;  %v209_v7 = vshll.u32 %v208_v2, 23  ;;  %v114_v29 = vmul.f32 -2.0, %v112_v22 }
  0x6a   :  { %v370_v14 = vadd.s32 4294967294, %v302_v53  ;;  %vm332_vm9 = vcmp.eq.s32.totalorder %v327_v63, 2  ;;  %vm329_vm11 = vcmp.eq.s32.totalorder %v327_v63, 0  ;;  %vm328_vm12 = vcmp.lt.s32.totalorder %v327_v63, 2 }
  0x6b   :  { %v210_v11 = vor.u32 4788187, %v209_v7  ;;  %v213_v12 = vcvt.s32.f32 %v206_v5  ;;  %vm124_vm8 = vcmp.eq.f32.partialorder %v114_v29, inf  ;;  %v127_v5 = vand.u32 2147483648, %v114_v29 }
  0x6c   :  { %vm371_vm14 = vcmp.lt.s32.totalorder %v370_v14, 0  ;;  %vm126_vm10 = vcmp.eq.f32.partialorder %v114_v29, 0.0 }
  0x6d   :  { %v211_v54 = vand.u32 2147483647, %v210_v11  ;;  %v305_v18 = vsel %vm371_vm14, 0, %v370_v14 }
  0x6e   :  { %v306_v19 = vsub.s32 32, %v305_v18  ;;  %v307_v20 = vshll.u32 %v298_v62, %v305_v18  ;;  %v310_v21 = vsub.s32 4294967266, %v305_v18  ;;  %v339_v62 = vld [vmem:[#allocation4] sm:$0xff] }
  0x6f   :  { %v214_v6 = vmul.f32 %v213_v12, %v211_v54 }
  0x70   :  { %v308_v25 = vshrl.u32 %v290_v15, %v306_v19  ;;  %v311_v56 = vadd.s32 127, %v310_v21 }
  0x71   :  { %v215_v17 = vxor.u32 2147483648, %v214_v6 }
  0x72   :  { %v309_v26 = vor.u32 %v308_v25, %v307_v20  ;;  %v312_v27 = vshll.u32 %v311_v56, 23  ;;  %v395_v36 = vpop.eup %394 }
  0x73   :  { %v216_v23 = vsel %vm133_vm13, %v215_v17, %v214_v6  ;;  %v116_v30 = vmul.f32 %v395_v36, %v545_v9  ;;  %vm326_vm13 = vweird.f32 %v489_v46 }
  0x74   :  { %v219_v4 = vsel %vm552_vm15, %v487_v45, %v216_v23  ;;  %v313_v32 = vor.u32 4788187, %v312_v27  ;;  %v316_v33 = vcvt.s32.f32 %v309_v26 }
  0x75   :  { %396 = vcosq.f32 %v219_v4  ;;  %v118_v44 = vsel %vm117_vm2, %v545_v9, %v116_v30 }
  0x76   :  { %398 = vsinq.f32 %v219_v4  ;;  %v314_v34 = vand.u32 2147483647, %v313_v32  ;;  %v121_v52 = vsel %vm119_vm3, %v120_v10, %v118_v44 }
  0x77   :  { %400 = vrsqrt.f32 %v114_v29 }
  0x78   :  { %v317_v37 = vmul.f32 %v316_v33, %v314_v34 }
  0x7a   :  { %v318_v1 = vxor.u32 2147483648, %v317_v37 }
  0x7c   :  { %v319_v28 = vsel %vm236_vm0, %v318_v1, %v317_v37 }
  0x7d   :  { %v322_v41 = vsel %vm570_vm1, %v489_v46, %v319_v28 }
  0x7e   :  { %402 = vcosq.f32 %v322_v41 }
  0x7f   :  { %404 = vsinq.f32 %v322_v41 }
  0x82   :  { %v397_v42 = vpop.eup %396 }
  0x83   :  { %v399_v43 = vpop.eup %398  ;;  %v230_v48 = vxor.u32 2147483648, %v397_v42 }
  0x84   :  { %v227_v49 = vxor.u32 2147483648, %v399_v43  ;;  %v401_v60 = vpop.eup %400 }
  0x85   :  { %v231_v50 = vsel %vm229_vm4, %v230_v48, %v399_v43  ;;  %v123_v2 = vmul.f32 %v401_v60, %v114_v29 }
  0x86   :  { %v228_v55 = vsel %vm226_vm5, %v397_v42, %v227_v49 }
  0x87   :  { %v232_v57 = vsel %vm225_vm6, %v228_v55, %v231_v50  ;;  %v125_v7 = vsel %vm124_vm8, %v114_v29, %v123_v2 }
  0x88   :  { %v233_v58 = vsel %vm223_vm7, nan, %v232_v57  ;;  %v128_v12 = vsel %vm126_vm10, %v127_v5, %v125_v7 }
  0x89   :  { %v337_v61 = vmul.f32 %v233_v58, %v121_v52 }
  0x8b   :  { %v341_v0 = vmul.f32 0.1, %v337_v61  ;;  %v403_v3 = vpop.eup %402 }
  0x8c   :  { %v405_v51 = vpop.eup %404  ;;  %v333_v8 = vxor.u32 2147483648, %v403_v3 }
  0x8d   :  { %v343_v45 = vadd.f32 %v341_v0, %v339_v62  ;;  %v330_v9 = vxor.u32 2147483648, %v405_v51 }
  0x8e   :  { %v334_v11 = vsel %vm332_vm9, %v333_v8, %v405_v51 }
  0x8f   :  { %345 = vst [vmem:[#allocation7] sm:$0xff] %v343_v45  ;;  %v331_v53 = vsel %vm329_vm11, %v403_v3, %v330_v9 }
  0x90   :  { %v335_v54 = vsel %vm328_vm12, %v331_v53, %v334_v11 }
  0x91   :  { %v336_v14 = vsel %vm326_vm13, nan, %v335_v54 }
  0x92   :  { %v338_v6 = vmul.f32 %v336_v14, %v128_v12 }
  0x94   :  { %v342_v15 = vmul.f32 0.1, %v338_v6 }
  0x96   :  { %v344_v16 = vadd.f32 %v342_v15, %v340_v13 }
  0x98   :  { %346 = vst [vmem:[#allocation7 + $0x8] sm:$0xff] %v344_v16 }
  0x99   :  { %437 = shalt.err (!%p434_p9)
}
  0x9a   :  { %358 = dma.vmem_to_hbm [thread:$0]  %s353_s9, 256, %s600_s2, [#allocation6], %s451_s12, %s451_s12, %s452_s13  }
  0x9b   :  { %448 = dma.done.wait [#allocation6], 256  }
  0x9c   :  { %449 = vsyncadd [#allocation6], 4294967040 }
  0x9d   :  { %362 = vsyncpa [#allocation5], 1 }
  0x9e   :  { %363 = vsyncpa [#allocation6], 1 }

</bundles_post_ra>
